<compile_context>
chip_gen: v7x
topology: tpu7x:2x2x1
jax: 0.10.0
libtpu: 0.0.40
codegen_flags: <defaults>
</compile_context>

<pallas_src>
import functools
import math

import jax
import jax.numpy as jnp
from jax.experimental import pallas as pl
from jax.experimental.pallas import tpu as pltpu


WEIGHT_DTYPE = jnp.bfloat16


# -----------------------------------------------------------------------------
# Small helpers.
# -----------------------------------------------------------------------------
def _vmem_capacity_bytes():
    """Per-core VMEM capacity; conservative fallback if the query fails."""
    try:
        return int(pltpu.get_tpu_info().vmem_capacity_bytes)
    except Exception:
        return 64 << 20  # v7x per-TensorCore VMEM (smallest in the fleet).


def _nbytes(shape, dtype):
    return math.prod(shape) * jnp.dtype(dtype).itemsize


def _maybe_vmem_limit(est_bytes):
    """Return a vmem_limit_bytes value only if the estimate needs a bump."""
    cap = _vmem_capacity_bytes()
    if est_bytes <= (12 << 20):          # fits even v5e's 16 MiB default scope.
        return None
    return int(min(max(est_bytes + (8 << 20), 32 << 20), cap - (8 << 20)))


def _sigmoid(y):
    # exp already occupies the EUP; approx reciprocal rides the same slot
    # instead of a VALU divide sequence (matters most on v5e).
    return pl.reciprocal(1.0 + jnp.exp(-y), approx=True)


def _operand_bytes(x, params, out_dtype=jnp.float32):
    """HBM bytes actually moved by a fused call (for pl.CostEstimate)."""
    M = x.shape[0]
    n_out = params[-1][0].shape[1]
    total = _nbytes(x.shape, x.dtype) + _nbytes((M, n_out), out_dtype)
    for w, b in params:
        total += _nbytes(w.shape, w.dtype) + _nbytes((b.shape[0],), jnp.float32)
    return total


def _fused_vmem_bytes(x, params):
    """VMEM footprint of a grid-less fused call: operands + intermediates."""
    M = x.shape[0]
    total = _operand_bytes(x, params)
    for w, _ in params[:-1]:
        total += _nbytes((M, w.shape[1]), jnp.float32)     # f32 pre-activation
        total += _nbytes((M, w.shape[1]), WEIGHT_DTYPE)    # bf16 post-cast
    return total


def _tail_vmem_bytes(M, params):
    (_, _), (w2, b2), (w3, b3) = params
    h1_like = jax.ShapeDtypeStruct((M, w2.shape[0]), WEIGHT_DTYPE)
    return _fused_vmem_bytes(h1_like, [(w2, b2), (w3, b3)])


# -----------------------------------------------------------------------------
# Path A: fully fused forward -- one grid-less pallas_call.
# -----------------------------------------------------------------------------
def _funnel_fused_kernel(x_ref, w1_ref, b1_ref, w2_ref, b2_ref, w3_ref, b3_ref,
                         o_ref):
    h = jnp.dot(x_ref[...], w1_ref[...], preferred_element_type=jnp.float32)
    h = jnp.maximum(h + b1_ref[...], 0.0).astype(w2_ref.dtype)
    h = jnp.dot(h, w2_ref[...], preferred_element_type=jnp.float32)
    h = jnp.maximum(h + b2_ref[...], 0.0).astype(w3_ref.dtype)
    y = jnp.dot(h, w3_ref[...], preferred_element_type=jnp.float32) + b3_ref[...]
    o_ref[...] = _sigmoid(y).astype(o_ref.dtype)


def _forward_fused(x, params, est_bytes):
    (w1, b1), (w2, b2), (w3, b3) = params
    M, K = x.shape
    n1, n2, n3 = w1.shape[1], w2.shape[1], w3.shape[1]
    cp_kwargs = {}
    lim = _maybe_vmem_limit(est_bytes)        # no 2x factor: no double-buffering
    if lim is not None:
        cp_kwargs["vmem_limit_bytes"] = lim
    ce = pl.CostEstimate(
        flops=2 * M * (K * n1 + n1 * n2 + n2 * n3),
        transcendentals=2 * M * n3,           # exp + approx reciprocal
        bytes_accessed=_operand_bytes(x, params))
    return pl.pallas_call(
        _funnel_fused_kernel,
        out_shape=jax.ShapeDtypeStruct((M, n3), jnp.float32),
        compiler_params=pltpu.CompilerParams(**cp_kwargs),
        cost_estimate=ce,
    )(x, w1, b1.reshape(1, -1), w2, b2.reshape(1, -1), w3, b3.reshape(1, -1))


# -----------------------------------------------------------------------------
# Path B tail: layers 2 + 3 fused into one grid-less call.
# -----------------------------------------------------------------------------
def _tail_fused_kernel(h_ref, w2_ref, b2_ref, w3_ref, b3_ref, o_ref):
    h = jnp.dot(h_ref[...], w2_ref[...], preferred_element_type=jnp.float32)
    h = jnp.maximum(h + b2_ref[...], 0.0).astype(w3_ref.dtype)
    y = jnp.dot(h, w3_ref[...], preferred_element_type=jnp.float32) + b3_ref[...]
    o_ref[...] = _sigmoid(y).astype(o_ref.dtype)


def _forward_tail_fused(h1, p2, p3, est_bytes):
    (w2, b2), (w3, b3) = p2, p3
    M, K = h1.shape
    n2, n3 = w2.shape[1], w3.shape[1]
    cp_kwargs = {}
    lim = _maybe_vmem_limit(est_bytes)
    if lim is not None:
        cp_kwargs["vmem_limit_bytes"] = lim
    ce = pl.CostEstimate(
        flops=2 * M * (K * n2 + n2 * n3),
        transcendentals=2 * M * n3,
        bytes_accessed=_operand_bytes(h1, [p2, p3]))
    return pl.pallas_call(
        _tail_fused_kernel,
        out_shape=jax.ShapeDtypeStruct((M, n3), jnp.float32),
        compiler_params=pltpu.CompilerParams(**cp_kwargs),
        cost_estimate=ce,
    )(h1, w2, b2.reshape(1, -1), w3, b3.reshape(1, -1))


# -----------------------------------------------------------------------------
# Tiled single layer: full-K blocks, stream only the output (N) axis.
# -----------------------------------------------------------------------------
def _linear_act_kernel(x_ref, w_ref, b_ref, o_ref, *, act):
    y = jnp.dot(x_ref[...], w_ref[...], preferred_element_type=jnp.float32)
    y = y + b_ref[...]
    if act == "relu":
        y = jnp.maximum(y, 0.0)
    elif act == "sigmoid":
        y = _sigmoid(y)
    o_ref[...] = y.astype(o_ref.dtype)


def _pick_tile_n(N, target, min_blocks=1):
    """Lane-dense (multiple-of-128) N tile <= target; >= min_blocks when N allows.

    Non-128-multiple N is handled by a pl.cdiv grid with a ragged (masked)
    last block instead of silently falling back to a full-N block.
    """
    if N <= 128:
        return N
    if min_blocks <= 1 and N <= target:
        return N
    tn = max(128, (min(target, N) // 128) * 128)
    while min_blocks > 1 and tn > 128 and pl.cdiv(N, tn) < min_blocks:
        tn -= 128
    return N if tn >= N else tn


def linear_act(x, w, b, *, act, out_dtype=jnp.float32, min_blocks=1):
    """y = act(x @ w + b); x:(M,K), w:(K,N) pre-transposed, b:(N,)."""
    M, K = x.shape
    Kw, N = w.shape
    assert K == Kw
    elem = jnp.dtype(w.dtype).itemsize
    cap = _vmem_capacity_bytes()

    # ~VMEM/6 per weight tile (double-buffered -> ~VMEM/3) keeps the grid short
    # (per-step overhead ~0.35 us) while leaving room for activation + output.
    tile_budget = cap // 6
    target = max(128, ((tile_budget // max(K * elem, 1)) // 128) * 128)
    tn = _pick_tile_n(N, target, min_blocks=min_blocks)
    grid_n = pl.cdiv(N, tn)

    est = (2 * K * tn * elem                        # double-buffered weight tile
           + 2 * _nbytes((M, K), x.dtype)           # resident activation
           + 2 * _nbytes((1, tn), jnp.float32)
           + 2 * _nbytes((M, tn), out_dtype))
    cp_kwargs = {"dimension_semantics": ("parallel",)}
    lim = _maybe_vmem_limit(est)
    if lim is not None:
        cp_kwargs["vmem_limit_bytes"] = lim

    ce = pl.CostEstimate(
        flops=2 * M * K * N,
        transcendentals=(2 * M * N) if act == "sigmoid" else 0,
        bytes_accessed=(_nbytes((M, K), x.dtype) + _nbytes((K, N), w.dtype)
                        + _nbytes((N,), jnp.float32)
                        + _nbytes((M, N), out_dtype)))

    return pl.pallas_call(
        functools.partial(_linear_act_kernel, act=act),
        out_shape=jax.ShapeDtypeStruct((M, N), out_dtype),
        grid=(grid_n,),
        in_specs=[
            pl.BlockSpec((M, K), lambda j: (0, 0)),   # activation stays resident
            pl.BlockSpec((K, tn), lambda j: (0, j)),  # stream weights over N only
            pl.BlockSpec((1, tn), lambda j: (0, j)),
        ],
        out_specs=pl.BlockSpec((M, tn), lambda j: (0, j)),
        compiler_params=pltpu.CompilerParams(**cp_kwargs),
        cost_estimate=ce,
    )(x, w, b.reshape(1, N))


def _forward_tiled(x, params):
    """Path C: per-layer tiled calls; ReLU layers emit bf16 directly."""
    h = x
    n = len(params)
    for i, (w, b) in enumerate(params):
        last = (i == n - 1)
        h = linear_act(h, w, b,
                       act=("sigmoid" if last else "relu"),
                       out_dtype=(jnp.float32 if last else WEIGHT_DTYPE))
    return h


# -----------------------------------------------------------------------------
# Public forward + params.
# -----------------------------------------------------------------------------
def sigmoid_funnel_net(v, params, *, force_path=None):
    """Forward pass of SigmoidFunnelNet (Dropout layers are identity in eval).

    Note: at M=2 the weight stream dominates regardless of batch; if multiple
    tiny batches are available, stack them so M >= 16 (bf16 sublane pack) --
    the extra rows are essentially free throughput on all TPU generations.
    """
    assert force_path in (None, "fused", "two_call", "tiled")
    x = v.astype(WEIGHT_DTYPE)
    M = x.shape[0]
    cap = _vmem_capacity_bytes()
    is_small_vmem = cap <= (64 << 20)          # v7x-like: 2 TCs, 64 MiB VMEM/TC.
    weight_bytes = sum(_nbytes(w.shape, w.dtype) for w, _ in params)
    est_fused = _fused_vmem_bytes(x, params)   # includes f32/bf16 intermediates
    est_tail = _tail_vmem_bytes(M, params)

    # Single fused call wins while launch overhead dominates the W1 stream; on
    # v7x switch to the N-tiled first layer earlier so both TensorCores (and
    # both HBM streams) share the dominant weight DMA.
    stream_threshold = (2 << 20) if is_small_vmem else (8 << 20)

    if force_path == "fused" or (force_path is None
                                 and est_fused + (4 << 20) <= cap
                                 and weight_bytes <= stream_threshold):
        return _forward_fused(x, params, est_fused)

    if force_path == "two_call" or (force_path is None
                                    and est_tail + (4 << 20) <= cap):
        (w1, b1), p2, p3 = params
        h1 = linear_act(x, w1, b1, act="relu", out_dtype=WEIGHT_DTYPE,
                        min_blocks=2 if is_small_vmem else 1)
        return _forward_tail_fused(h1, p2, p3, est_tail)

    return _forward_tiled(x, params)


def init_params(key, features_size, output_dim, weight_dtype=WEIGHT_DTYPE):
    """PyTorch-style init U(-1/sqrt(fan_in), 1/sqrt(fan_in)).

    Weights are stored transposed (in, out) and cast to bf16 once -- the net is
    HBM-bandwidth bound, so halving weight bytes ~halves kernel wall time.
    Biases stay f32 (added after the f32 accumulation).
    """
    out_prod = int(math.prod(output_dim))
    dims = [
        (features_size, features_size // 2),
        (features_size // 2, features_size // 4),
        (features_size // 4, out_prod),
    ]
    params = []
    for fan_in, fan_out in dims:
        key, kw, kb = jax.random.split(key, 3)
        bound = 1.0 / math.sqrt(fan_in)
        w = jax.random.uniform(kw, (fan_in, fan_out), jnp.float32, -bound, bound)
        b = jax.random.uniform(kb, (fan_out,), jnp.float32, -bound, bound)
        params.append((w.astype(weight_dtype), b))
    return params


def reference_forward(v, params):
    """Pure-JAX reference with the same bf16 weight / f32 accumulate math."""
    h = v
    n = len(params)
    for i, (w, b) in enumerate(params):
        y = jnp.dot(h.astype(w.dtype), w, preferred_element_type=jnp.float32) + b
        h = jnp.maximum(y, 0.0) if i < n - 1 else jax.nn.sigmoid(y)
    return h


if __name__ == "__main__":
    batch = 2
    features_size = 512        # funnel: 512 -> 256 -> 128 -> prod(output_dim)
    output_dim = (2, 64)       # prod = 128
    out_prod = int(math.prod(output_dim))

    key = jax.random.PRNGKey(0)
    kv, kp = jax.random.split(key)
    v = jax.random.normal(kv, (batch, features_size), jnp.float32)
    params = init_params(kp, features_size, output_dim)

    # Exercise all three paths: auto (fused at this size), the two-call
    # streaming path, and the per-layer tiled fallback.
    out_auto = jax.block_until_ready(sigmoid_funnel_net(v, params))
    out_two = jax.block_until_ready(
        sigmoid_funnel_net(v, params, force_path="two_call"))
    out_tiled = jax.block_until_ready(
        sigmoid_funnel_net(v, params, force_path="tiled"))

    ref = reference_forward(v, params)
    for name, out in (("auto", out_auto), ("two_call", out_two),
                      ("tiled", out_tiled)):
        assert out.shape == (batch, out_prod), (name, out.shape)
        err = float(jnp.max(jnp.abs(out - ref)))
        assert jnp.allclose(out, ref, atol=2e-2, rtol=2e-2), (name, err)

    print("KERNEL_OK")
</pallas_src>

<mosaic_0001>
module attributes {stable_mosaic.version = 11 : i64} {
  func.func @_funnel_fused_kernel(%arg0: memref<2x512xbf16, #tpu.memory_space<vmem>>, %arg1: memref<512x256xbf16, #tpu.memory_space<vmem>>, %arg2: memref<1x256xf32, #tpu.memory_space<vmem>>, %arg3: memref<256x128xbf16, #tpu.memory_space<vmem>>, %arg4: memref<1x128xf32, #tpu.memory_space<vmem>>, %arg5: memref<128x128xbf16, #tpu.memory_space<vmem>>, %arg6: memref<1x128xf32, #tpu.memory_space<vmem>>, %arg7: memref<2x128xf32, #tpu.memory_space<vmem>>) attributes {dimension_semantics = [], scalar_prefetch = 0 : i64, scratch_operands = 0 : i64, tpu.core_type = #tpu.core_type<tc>} {
    %c0 = arith.constant 0 : index
    %c0_0 = arith.constant 0 : index
    %0 = vector.load %arg0[%c0, %c0_0] : memref<2x512xbf16, #tpu.memory_space<vmem>>, vector<2x512xbf16>
    %c0_1 = arith.constant 0 : index
    %c0_2 = arith.constant 0 : index
    %1 = vector.load %arg1[%c0_1, %c0_2] : memref<512x256xbf16, #tpu.memory_space<vmem>>, vector<512x256xbf16>
    %cst = arith.constant dense<0.000000e+00> : vector<2x256xf32>
    %2 = tpu.matmul %0, %1, %cst {dimension_numbers = #tpu.dot_dimension_numbers<[1], [0], [0], [1], [0, 0, 1, 1], [], []>} : vector<2x512xbf16>, vector<512x256xbf16>, vector<2x256xf32> -> vector<2x256xf32>
    %c0_3 = arith.constant 0 : index
    %c0_4 = arith.constant 0 : index
    %3 = vector.load %arg2[%c0_3, %c0_4] : memref<1x256xf32, #tpu.memory_space<vmem>>, vector<1x256xf32>
    %4 = vector.broadcast %3 : vector<1x256xf32> to vector<2x256xf32>
    %5 = arith.addf %2, %4 : vector<2x256xf32>
    %cst_5 = arith.constant 0.000000e+00 : f32
    %6 = vector.broadcast %cst_5 : f32 to vector<2x256xf32>
    %7 = arith.maximumf %5, %6 : vector<2x256xf32>
    %8 = arith.truncf %7 : vector<2x256xf32> to vector<2x256xbf16>
    %c0_6 = arith.constant 0 : index
    %c0_7 = arith.constant 0 : index
    %9 = vector.load %arg3[%c0_6, %c0_7] : memref<256x128xbf16, #tpu.memory_space<vmem>>, vector<256x128xbf16>
    %cst_8 = arith.constant dense<0.000000e+00> : vector<2x128xf32>
    %10 = tpu.matmul %8, %9, %cst_8 {dimension_numbers = #tpu.dot_dimension_numbers<[1], [0], [0], [1], [0, 0, 1, 1], [], []>} : vector<2x256xbf16>, vector<256x128xbf16>, vector<2x128xf32> -> vector<2x128xf32>
    %c0_9 = arith.constant 0 : index
    %c0_10 = arith.constant 0 : index
    %11 = vector.load %arg4[%c0_9, %c0_10] : memref<1x128xf32, #tpu.memory_space<vmem>>, vector<1x128xf32>
    %12 = vector.broadcast %11 : vector<1x128xf32> to vector<2x128xf32>
    %13 = arith.addf %10, %12 : vector<2x128xf32>
    %cst_11 = arith.constant 0.000000e+00 : f32
    %14 = vector.broadcast %cst_11 : f32 to vector<2x128xf32>
    %15 = arith.maximumf %13, %14 : vector<2x128xf32>
    %16 = arith.truncf %15 : vector<2x128xf32> to vector<2x128xbf16>
    %c0_12 = arith.constant 0 : index
    %c0_13 = arith.constant 0 : index
    %17 = vector.load %arg5[%c0_12, %c0_13] : memref<128x128xbf16, #tpu.memory_space<vmem>>, vector<128x128xbf16>
    %cst_14 = arith.constant dense<0.000000e+00> : vector<2x128xf32>
    %18 = tpu.matmul %16, %17, %cst_14 {dimension_numbers = #tpu.dot_dimension_numbers<[1], [0], [0], [1], [0, 0, 1, 1], [], []>} : vector<2x128xbf16>, vector<128x128xbf16>, vector<2x128xf32> -> vector<2x128xf32>
    %c0_15 = arith.constant 0 : index
    %c0_16 = arith.constant 0 : index
    %19 = vector.load %arg6[%c0_15, %c0_16] : memref<1x128xf32, #tpu.memory_space<vmem>>, vector<1x128xf32>
    %20 = vector.broadcast %19 : vector<1x128xf32> to vector<2x128xf32>
    %21 = arith.addf %18, %20 : vector<2x128xf32>
    %cst_17 = arith.constant 0.000000e+00 : f32
    %22 = vector.broadcast %cst_17 : f32 to vector<2x128xf32>
    %23 = arith.subf %22, %21 : vector<2x128xf32>
    %24 = math.exp %23 : vector<2x128xf32>
    %cst_18 = arith.constant 1.000000e+00 : f32
    %25 = vector.broadcast %cst_18 : f32 to vector<2x128xf32>
    %26 = arith.addf %25, %24 : vector<2x128xf32>
    %27 = tpu.reciprocal %26 {approx = true} : vector<2x128xf32> -> vector<2x128xf32>
    %c0_19 = arith.constant 0 : index
    %c0_20 = arith.constant 0 : index
    %28 = vector.load %arg7[%c0_19, %c0_20] : memref<2x128xf32, #tpu.memory_space<vmem>>, vector<2x128xf32>
    tpu.vector_store %arg7[%c0_19, %c0_20], %27 {strides = array<i32>} : memref<2x128xf32, #tpu.memory_space<vmem>>, vector<2x128xf32>,
    return
  }
}

</mosaic_0001>

<bundles_post_ra>
// kernel: tpu_custom_call.1
= control target key start
LH: loop header
LB: loop body
LE: loop exit
PB: predicated region body
PF: predicated region fallthrough
CT: control target
= control target key end

     0   :  { %12 = vsyncpa [#allocation3], 0  ;;  %s1451_s0 = inlined_call_operand.hbm [shape: bf16[2,512], index: 0, kind: input, shape index: {}]   ;;  %s1452_s1 = inlined_call_operand.hbm [shape: bf16[512,256], index: 1, kind: input, shape index: {}]   ;;  %s1453_s2 = inlined_call_operand.vmem [shape: f32[1,256], index: 2, kind: input, shape index: {}]   ;;  %s1454_s3 = inlined_call_operand.hbm [shape: bf16[256,128], index: 3, kind: input, shape index: {}]   ;;  %s1455_s4 = inlined_call_operand.vmem [shape: f32[1,128], index: 4, kind: input, shape index: {}]   ;;  %s1456_s5 = inlined_call_operand.hbm [shape: bf16[128,128], index: 5, kind: input, shape index: {}]   ;;  %s1457_s6 = inlined_call_operand.vmem [shape: f32[1,128], index: 6, kind: input, shape index: {}]   ;;  %s1458_s7 = inlined_call_operand.hbm [shape: f32[2,128], index: 7, kind: output, shape index: {}]  }
   0x1   :  { %13 = vsyncpa [#allocation6], 0 }
   0x2   :  { %14 = vsyncpa [#allocation9], 0 }
   0x3   :  { %15 = vsyncpa [#allocation4], 0  ;;  %s1306_s24 = smov [#allocation5]   ;;  %s1188_s28 = scalar_lea.hbm %s1452_s1, 8192 }
   0x4   :  { %s31_s25 = sshll.u32 %s1306_s24, 4  ;;  %p1189_p0 = scmp.ne.s32.totalorder %s1452_s1, %s1188_s28  ;;  %s32_s25 = int_to_ptr.vmem [resolvable:$true] %s31_s25 }
   0x5   :  { %p1192_p1 = scmp.lt.u32.totalorder %s1188_s28, %s1452_s1 }
   0x7   :  { %p1194_p2 = pnand %p1192_p1, %p1189_p0 }
   0x9   :  { %1197 = shalt.err (!%p1194_p2)
}
   0xa   :  { %s1198_s10 = scalar_lea.vmem %s32_s25, 8192  ;;  %p1203_p4 = scmp.lt.s32.totalorder %s32_s25, %s32_s25 }
   0xb   :  { %p1199_p3 = scmp.ne.s32.totalorder %s32_s25, %s1198_s10  ;;  %p1204_p5 = scmp.lt.s32.totalorder %s1198_s10, %s1198_s10 }
   0xd   :  { %p1205_p6 = por %p1204_p5, %p1203_p4 }
   0xf   :  { %p1206_p7 = pnand %p1205_p6, %p1199_p3 }
  0x11   :  { %1209 = shalt.err (!%p1206_p7)
}
  0x12   :  { %s1307_s11 = smov 128   ;;  %s1308_s12 = smov 8  }
  0x13   :  { %37 = dma.hbm_to_vmem [thread:$0]  %s1452_s1, 8192, %s32_s25, [#allocation6], %s1307_s11, %s1307_s11, %s1308_s12  }
  0x14   :  { %s1309_s15 = smov [#allocation2]   ;;  %s1310_s17 = smov [#allocation7]  }
  0x15   :  { %s22_s16 = sshll.u32 %s1309_s15, 4  ;;  %s45_s18 = sshll.u32 %s1310_s17, 4  ;;  %s23_s16 = int_to_ptr.vmem [resolvable:$true] %s22_s16  ;;  %s46_s18 = int_to_ptr.vmem [resolvable:$true] %s45_s18 }
  0x16   :  { %s1210_s21 = scalar_lea.hbm %s1451_s0, 64 }
  0x17   :  { %p1211_p8 = scmp.ne.s32.totalorder %s1451_s0, %s1210_s21  ;;  %p1214_p9 = scmp.lt.u32.totalorder %s1210_s21, %s1451_s0 }
  0x19   :  { %p1216_p10 = pnand %p1214_p9, %p1211_p8 }
  0x1b   :  { %1219 = shalt.err (!%p1216_p10)
}
  0x1c   :  { %s1220_s1 = scalar_lea.vmem %s23_s16, 64  ;;  %p1225_p12 = scmp.lt.s32.totalorder %s23_s16, %s23_s16 }
  0x1d   :  { %p1221_p11 = scmp.ne.s32.totalorder %s23_s16, %s1220_s1  ;;  %p1226_p13 = scmp.lt.s32.totalorder %s1220_s1, %s1220_s1 }
  0x1f   :  { %p1227_p0 = por %p1226_p13, %p1225_p12 }
  0x21   :  { %p1228_p1 = pnand %p1227_p0, %p1221_p11 }
  0x23   :  { %1231 = shalt.err (!%p1228_p1)
}
  0x24   :  { %25 = dma.hbm_to_vmem [thread:$0]  %s1451_s0, 64, %s23_s16, [#allocation3]  }
  0x25   :  { %s1232_s30 = scalar_lea.hbm %s1454_s3, 2048 }
  0x26   :  { %p1233_p2 = scmp.ne.s32.totalorder %s1454_s3, %s1232_s30  ;;  %p1236_p3 = scmp.lt.u32.totalorder %s1232_s30, %s1454_s3 }
  0x28   :  { %p1238_p4 = pnand %p1236_p3, %p1233_p2 }
  0x2a   :  { %1241 = shalt.err (!%p1238_p4)
}
  0x2b   :  { %s1242_s12 = scalar_lea.vmem %s46_s18, 2048  ;;  %p1247_p6 = scmp.lt.s32.totalorder %s46_s18, %s46_s18 }
  0x2c   :  { %p1243_p5 = scmp.ne.s32.totalorder %s46_s18, %s1242_s12  ;;  %p1248_p7 = scmp.lt.s32.totalorder %s1242_s12, %s1242_s12 }
  0x2e   :  { %p1249_p8 = por %p1248_p7, %p1247_p6 }
  0x30   :  { %p1250_p9 = pnand %p1249_p8, %p1243_p5 }
  0x32   :  { %1253 = shalt.err (!%p1250_p9)
}
  0x33   :  { %s1311_s0 = smov 64   ;;  %s1312_s13 = smov 4  }
  0x34   :  { %51 = dma.hbm_to_vmem [thread:$0]  %s1454_s3, 2048, %s46_s18, [#allocation6], %s1311_s0, %s1311_s0, %s1312_s13  }
  0x35   :  { %s1313_s16 = smov [#allocation8]   ;;  %s1254_s21 = scalar_lea.hbm %s1456_s5, 1024 }
  0x36   :  { %s59_s17 = sshll.u32 %s1313_s16, 4  ;;  %p1255_p10 = scmp.ne.s32.totalorder %s1456_s5, %s1254_s21  ;;  %s60_s17 = int_to_ptr.vmem [resolvable:$true] %s59_s17 }
  0x37   :  { %p1258_p11 = scmp.lt.u32.totalorder %s1254_s21, %s1456_s5 }
  0x39   :  { %p1260_p12 = pnand %p1258_p11, %p1255_p10 }
  0x3b   :  { %1263 = shalt.err (!%p1260_p12)
}
  0x3c   :  { %s1264_s1 = scalar_lea.vmem %s60_s17, 1024  ;;  %p1269_p0 = scmp.lt.s32.totalorder %s60_s17, %s60_s17 }
  0x3d   :  { %p1265_p13 = scmp.ne.s32.totalorder %s60_s17, %s1264_s1  ;;  %p1270_p1 = scmp.lt.s32.totalorder %s1264_s1, %s1264_s1 }
  0x3f   :  { %p1271_p2 = por %p1270_p1, %p1269_p0 }
  0x41   :  { %p1272_p3 = pnand %p1271_p2, %p1265_p13 }
  0x43   :  { %1275 = shalt.err (!%p1272_p3)
}
  0x44   :  { %65 = dma.hbm_to_vmem [thread:$0]  %s1456_s5, 1024, %s60_s17, [#allocation9], %s1311_s0, %s1311_s0, %s1312_s13  }
  0x45   :  { %1298 = dma.done.wait [#allocation3], 64  }
  0x46   :  { %1299 = vsyncadd [#allocation3], 4294967232 }
  0x47   :  { %1300 = dma.done.wait [#allocation6], 10240  }
  0x48   :  { %1301 = vsyncadd [#allocation6], 4294957056 }
  0x49   :  { %1302 = dma.done.wait [#allocation9], 1024  }
  0x4a   :  { %1303 = vsyncadd [#allocation9], 4294966272  ;;  %v1064_v0 = vld [vmem:[#allocation5 + $0x4] ss:$8 sps:$4 sm:$0xff]   ;;  %v1066_v1 = vld [vmem:[#allocation5] ss:$8 sps:$4 sm:$0xff]   ;;  %v148_v9 = vlaneseq }
  0x4b   :  { %507 = vmatprep.subr.bf16.mxu0 %v1064_v0  ;;  %v1067_v2 = vld [vmem:[#allocation5 + $0x14] ss:$8 sps:$4 sm:$0xff]   ;;  %v1069_v3 = vld [vmem:[#allocation5 + $0x10] ss:$8 sps:$4 sm:$0xff]   ;;  %v1070_v4 = vld [vmem:[#allocation5 + $0x24] ss:$8 sps:$4 sm:$0xff]  }
  0x4c   :  { %508 = vmatpush1.bf16.msra.mxu0 %v1066_v1  ;;  %v1072_v5 = vld [vmem:[#allocation5 + $0x20] ss:$8 sps:$4 sm:$0xff]   ;;  %v1073_v6 = vld [vmem:[#allocation5 + $0x34] ss:$8 sps:$4 sm:$0xff]   ;;  %v1075_v7 = vld [vmem:[#allocation5 + $0x30] ss:$8 sps:$4 sm:$0xff]  }
  0x4d   :  { %509 = vmatprep.subr.bf16.mxu0 %v1067_v2  ;;  %v1076_v8 = vld [vmem:[#allocation5 + $0x44] ss:$8 sps:$4 sm:$0xff]   ;;  %v1314_v10 = vmov 1966171168   ;;  %v1078_v12 = vld [vmem:[#allocation5 + $0x40] ss:$8 sps:$4 sm:$0xff]  }
  0x4e   :  { %v168_v11 = vunpack.c.l.s4 %v1314_v10  ;;  %v1079_v13 = vld [vmem:[#allocation5 + $0x54] ss:$8 sps:$4 sm:$0xff]   ;;  %v1406_v14 = vshrl.u32 %v148_v9, 7  ;;  %v1081_v16 = vld [vmem:[#allocation5 + $0x50] ss:$8 sps:$4 sm:$0xff]   ;;  %v1160_v34 = vld [vmem:[#allocation7 + $0x40] sm:$0xff]  }
  0x4f   :  { %v1082_v17 = vld [vmem:[#allocation5 + $0x64] ss:$8 sps:$4 sm:$0xff]   ;;  %v1411_v19 = vld.sshfl [vmem:[#allocation2] sm:$0x33 pattern:$0x75316420]  ;;  %995 = vmatprep.subr.bf16.mxu1 %v1160_v34 }
  0x50   :  { %510 = vmatpush1.bf16.msra.mxu0 %v1069_v3  ;;  %v169_v15 = vunpack.c.0.s8 %v168_v11  ;;  %v166_v20 = vcombine.high %v1411_v19, %v1411_v19  ;;  %v1084_v21 = vld [vmem:[#allocation5 + $0x60] ss:$8 sps:$4 sm:$0xff]   ;;  %v1085_v22 = vld [vmem:[#allocation5 + $0x74] ss:$8 sps:$4 sm:$0xff]   ;;  %v1087_v24 = vld [vmem:[#allocation5 + $0x70] ss:$8 sps:$4 sm:$0xff]  }
  0x51   :  { %511 = vmatprep.subr.bf16.mxu0 %v1070_v4  ;;  %v1088_v25 = vld [vmem:[#allocation5 + $0x84] ss:$8 sps:$4 sm:$0xff]   ;;  %v1090_v26 = vld [vmem:[#allocation5 + $0x80] ss:$8 sps:$4 sm:$0xff]   ;;  %v1091_v27 = vld [vmem:[#allocation5 + $0x94] ss:$8 sps:$4 sm:$0xff]  }
  0x52   :  { %v1409_v18 = vsub.s32 %v169_v15, %v1406_v14  ;;  %v1093_v28 = vld [vmem:[#allocation5 + $0x90] ss:$8 sps:$4 sm:$0xff]   ;;  %v1094_v29 = vld [vmem:[#allocation5 + $0xa4] ss:$8 sps:$4 sm:$0xff]   ;;  %v1096_v30 = vld [vmem:[#allocation5 + $0xa0] ss:$8 sps:$4 sm:$0xff]  }
  0x53   :  { %v1097_v31 = vld [vmem:[#allocation5 + $0xb4] ss:$8 sps:$4 sm:$0xff]   ;;  %v1099_v32 = vld [vmem:[#allocation5 + $0xb0] ss:$8 sps:$4 sm:$0xff]   ;;  %v1100_v33 = vld [vmem:[#allocation5 + $0xc4] ss:$8 sps:$4 sm:$0xff]  }
  0x54   :  { %512 = vmatpush1.bf16.msra.mxu0 %v1072_v5  ;;  %v1416_v23 = vrot.slane %v166_v20, %v1409_v18  ;;  %v1102_v35 = vld [vmem:[#allocation5 + $0xc0] ss:$8 sps:$4 sm:$0xff]   ;;  %v1103_v37 = vld [vmem:[#allocation5 + $0xd4] ss:$8 sps:$4 sm:$0xff]   ;;  %v1105_v41 = vld [vmem:[#allocation5 + $0xd0] ss:$8 sps:$4 sm:$0xff]   ;;  %v1421_v53 = vrot.slane %v1411_v19, %v1409_v18 }
  0x55   :  { %513 = vmatprep.subr.bf16.mxu0 %v1073_v6  ;;  %v1161_v36 = vld [vmem:[#allocation7] sm:$0xff]   ;;  %v1162_v38 = vld [vmem:[#allocation7 + $0x48] sm:$0xff]   ;;  %v1164_v40 = vld [vmem:[#allocation7 + $0x50] sm:$0xff]   ;;  %vm1316_vm0 = vmmov 0  }
  0x56   :  { %539 = vmatprep.mubr.bf16.mxu0 %v1416_v23  ;;  %996 = vmatpush3.bf16.msra.mxu1 %v1161_v36  ;;  %v1163_v39 = vld [vmem:[#allocation7 + $0x8] sm:$0xff]   ;;  %v1165_v43 = vld [vmem:[#allocation7 + $0x10] sm:$0xff]   ;;  %v1166_v44 = vld [vmem:[#allocation7 + $0x58] sm:$0xff]   ;;  %v182_v54 = vcombine.high %v1416_v23, %v1416_v23 }
  0x57   :  { %997 = vmatprep.subr.bf16.mxu1 %v1162_v38  ;;  %v1106_v42 = vld [vmem:[#allocation5 + $0xe4] ss:$8 sps:$4 sm:$0xff]   ;;  %v1108_v45 = vld [vmem:[#allocation5 + $0xe0] ss:$8 sps:$4 sm:$0xff]   ;;  %v1109_v46 = vld [vmem:[#allocation5 + $0xf4] ss:$8 sps:$4 sm:$0xff]  }
  0x58   :  { %514 = vmatpush1.bf16.msra.mxu0 %v1075_v7  ;;  %v1167_v47 = vld [vmem:[#allocation7 + $0x18] sm:$0xff]   ;;  %v1168_v48 = vld [vmem:[#allocation7 + $0x60] sm:$0xff]   ;;  %v1170_v52 = vld [vmem:[#allocation7 + $0x68] sm:$0xff]  }
  0x59   :  { %515 = vmatprep.subr.bf16.mxu0 %v1076_v8  ;;  %v1111_v49 = vld [vmem:[#allocation5 + $0xf0] ss:$8 sps:$4 sm:$0xff]   ;;  %v1169_v50 = vld [vmem:[#allocation7 + $0x20] sm:$0xff]   ;;  %v1117_v56 = vld [vmem:[#allocation5 + $0x114] ss:$8 sps:$4 sm:$0xff]  }
  0x5a   :  { %998 = vmatpush3.bf16.msra.mxu1 %v1163_v39  ;;  %v1114_v51 = vld [vmem:[#allocation5 + $0x104] ss:$8 sps:$4 sm:$0xff]   ;;  %v1112_v55 = vld [vmem:[#allocation5 + $0x100] ss:$8 sps:$4 sm:$0xff]   ;;  %v1115_v58 = vld [vmem:[#allocation5 + $0x110] ss:$8 sps:$4 sm:$0xff]  }
  0x5b   :  { %999 = vmatprep.subr.bf16.mxu1 %v1164_v40  ;;  %v1171_v57 = vld [vmem:[#allocation7 + $0x28] sm:$0xff]   ;;  %v1123_v61 = vld [vmem:[#allocation5 + $0x134] ss:$8 sps:$4 sm:$0xff]   ;;  %v1121_v62 = vld [vmem:[#allocation5 + $0x130] ss:$8 sps:$4 sm:$0xff]  }
  0x5c   :  { %516 = vmatpush1.bf16.msra.mxu0 %v1078_v12  ;;  %v1120_v59 = vld [vmem:[#allocation5 + $0x124] ss:$8 sps:$4 sm:$0xff]   ;;  %v1118_v60 = vld [vmem:[#allocation5 + $0x120] ss:$8 sps:$4 sm:$0xff]   ;;  %v1129_v1 = vld [vmem:[#allocation5 + $0x154] ss:$8 sps:$4 sm:$0xff]  }
  0x5d   :  { %517 = vmatprep.subr.bf16.mxu0 %v1079_v13  ;;  %v1126_v63 = vld [vmem:[#allocation5 + $0x144] ss:$8 sps:$4 sm:$0xff]   ;;  %v1124_v0 = vld [vmem:[#allocation5 + $0x140] ss:$8 sps:$4 sm:$0xff]   ;;  %v1127_v2 = vld [vmem:[#allocation5 + $0x150] ss:$8 sps:$4 sm:$0xff]  }
  0x5e   :  { %1000 = vmatpush3.bf16.msra.mxu1 %v1165_v43  ;;  %v1132_v3 = vld [vmem:[#allocation5 + $0x164] ss:$8 sps:$4 sm:$0xff]   ;;  %v1130_v4 = vld [vmem:[#allocation5 + $0x160] ss:$8 sps:$4 sm:$0xff]   ;;  %v1135_v5 = vld [vmem:[#allocation5 + $0x174] ss:$8 sps:$4 sm:$0xff]  }
  0x5f   :  { %1001 = vmatprep.subr.bf16.mxu1 %v1166_v44  ;;  %v1133_v6 = vld [vmem:[#allocation5 + $0x170] ss:$8 sps:$4 sm:$0xff]   ;;  %v1138_v7 = vld [vmem:[#allocation5 + $0x184] ss:$8 sps:$4 sm:$0xff]   ;;  %v1136_v8 = vld [vmem:[#allocation5 + $0x180] ss:$8 sps:$4 sm:$0xff]  }
  0x60   :  { %518 = vmatpush1.bf16.msra.mxu0 %v1081_v16  ;;  %v1141_v9 = vld [vmem:[#allocation5 + $0x194] ss:$8 sps:$4 sm:$0xff]   ;;  %v1139_v10 = vld [vmem:[#allocation5 + $0x190] ss:$8 sps:$4 sm:$0xff]   ;;  %v1144_v11 = vld [vmem:[#allocation5 + $0x1a4] ss:$8 sps:$4 sm:$0xff]  }
  0x61   :  { %519 = vmatprep.subr.bf16.mxu0 %v1082_v17  ;;  %v1142_v12 = vld [vmem:[#allocation5 + $0x1a0] ss:$8 sps:$4 sm:$0xff]   ;;  %v1147_v13 = vld [vmem:[#allocation5 + $0x1b4] ss:$8 sps:$4 sm:$0xff]   ;;  %v1145_v15 = vld [vmem:[#allocation5 + $0x1b0] ss:$8 sps:$4 sm:$0xff]  }
  0x62   :  { %1002 = vmatpush3.bf16.msra.mxu1 %v1167_v47  ;;  %v1150_v16 = vld [vmem:[#allocation5 + $0x1c4] ss:$8 sps:$4 sm:$0xff]   ;;  %v1148_v17 = vld [vmem:[#allocation5 + $0x1c0] ss:$8 sps:$4 sm:$0xff]   ;;  %v1153_v18 = vld [vmem:[#allocation5 + $0x1d4] ss:$8 sps:$4 sm:$0xff]  }
  0x63   :  { %1003 = vmatprep.subr.bf16.mxu1 %v1168_v48  ;;  %v1151_v19 = vld [vmem:[#allocation5 + $0x1d0] ss:$8 sps:$4 sm:$0xff]   ;;  %v1156_v20 = vld [vmem:[#allocation5 + $0x1e4] ss:$8 sps:$4 sm:$0xff]  }
  0x64   :  { %520 = vmatpush1.bf16.msra.mxu0 %v1084_v21  ;;  %v1154_v21 = vld [vmem:[#allocation5 + $0x1e0] ss:$8 sps:$4 sm:$0xff]   ;;  %v1157_v23 = vld [vmem:[#allocation5 + $0x1f0] ss:$8 sps:$4 sm:$0xff]  }
  0x65   :  { %521 = vmatprep.subr.bf16.mxu0 %v1085_v22  ;;  %v1159_v22 = vld [vmem:[#allocation5 + $0x1f4] ss:$8 sps:$4 sm:$0xff]   ;;  %v1176_v44 = vld [vmem:[#allocation8] sm:$0xff]  }
  0x66   :  { %1004 = vmatpush3.bf16.msra.mxu1 %v1169_v50  ;;  %v1179_v47 = vld [vmem:[#allocation8 + $0x18] sm:$0xff]   ;;  %v1180_v48 = vld [vmem:[#allocation8 + $0x20] sm:$0xff]   ;;  %v1182_v50 = vld [vmem:[#allocation8 + $0x30] sm:$0xff]  }
  0x67   :  { %1005 = vmatprep.subr.bf16.mxu1 %v1170_v52 }
  0x68   :  { %522 = vmatpush1.bf16.msra.mxu0 %v1087_v24  ;;  %v181_v24 = vcombine.high %v1421_v53, %v1421_v53 }
  0x69   :  { %523 = vmatprep.subr.bf16.mxu0 %v1088_v25  ;;  %v1172_v25 = vld [vmem:[#allocation7 + $0x70] sm:$0xff]  }
  0x6a   :  { %1006 = vmatpush3.bf16.msra.mxu1 %v1171_v57 }
  0x6b   :  { %1007 = vmatprep.subr.bf16.mxu1 %v1172_v25 }
  0x6c   :  { %524 = vmatpush1.bf16.msra.mxu0 %v1090_v26  ;;  %v1173_v26 = vld [vmem:[#allocation7 + $0x30] sm:$0xff]  }
  0x6d   :  { %525 = vmatprep.subr.bf16.mxu0 %v1091_v27  ;;  %v1174_v27 = vld [vmem:[#allocation7 + $0x78] sm:$0xff]  }
  0x6e   :  { %1008 = vmatpush3.bf16.msra.mxu1 %v1173_v26 }
  0x6f   :  { %1009 = vmatprep.subr.bf16.mxu1 %v1174_v27 }
  0x70   :  { %526 = vmatpush1.bf16.msra.mxu0 %v1093_v28  ;;  %v1175_v28 = vld [vmem:[#allocation7 + $0x38] sm:$0xff]  }
  0x71   :  { %527 = vmatprep.subr.bf16.mxu0 %v1094_v29  ;;  %v1315_v29 = vmov 0.0  }
  0x72   :  { %1010 = vmatpush3.bf16.msra.mxu1 %v1175_v28 }
  0x73   :  { %1026 = vmatprep.subr.bf16.mxu1 %v1315_v29 }
  0x74   :  { %528 = vmatpush1.bf16.msra.mxu0 %v1096_v30  ;;  %v150_v30 = vsub.s32 0, %v1406_v14 }
  0x75   :  { %529 = vmatprep.subr.bf16.mxu0 %v1097_v31  ;;  %v146_v31 = vld [vmem:[%s1453_s2] sm:$0x3] }
  0x78   :  { %530 = vmatpush1.bf16.msra.mxu0 %v1099_v32  ;;  %v154_v32 = vsub.s32 1, %v1406_v14  ;;  %v1178_v14 = vld [vmem:[#allocation8 + $0x10] sm:$0xff]  }
  0x79   :  { %531 = vmatprep.subr.bf16.mxu0 %v1100_v33  ;;  %v151_v33 = vrot.slane %v146_v31, %v150_v30 }
  0x7a   :  { %v155_v34 = vrot.slane %v146_v31, %v154_v32 }
  0x7c   :  { %532 = vmatpush1.bf16.msra.mxu0 %v1102_v35 }
  0x7d   :  { %533 = vmatprep.subr.bf16.mxu0 %v1103_v37 }
  0x80   :  { %534 = vmatpush1.bf16.msra.mxu0 %v1105_v41 }
  0x81   :  { %535 = vmatprep.subr.bf16.mxu0 %v1106_v42 }
  0x84   :  { %536 = vmatpush1.bf16.msra.mxu0 %v1108_v45 }
  0x85   :  { %537 = vmatprep.subr.bf16.mxu0 %v1109_v46  ;;  %v1177_v46 = vld [vmem:[#allocation8 + $0x8] sm:$0xff]  }
  0x88   :  { %538 = vmatpush1.bf16.msra.mxu0 %v1111_v49  ;;  %v1181_v49 = vld [vmem:[#allocation8 + $0x28] sm:$0xff]  }
  0x89   :  { %548 = vmatprep.subr.bf16.mxu0 %v1114_v51  ;;  %v1183_v51 = vld [vmem:[#allocation8 + $0x38] sm:$0xff]  }
  0x8b   :  { %540 = vmatmul.mubr.bf16.vlgmr.msra.gmra.mrb[0].mxu0 %v1421_v53  ;;  %v969_v53 = vld [vmem:[%s1455_s4] ss:$0 sm:$0xff]  ;;  %s1317_s4 = smov [#allocation10]  }
  0x8c   :  { %549 = vmatpush1.bf16.msra.mxu0 %v1112_v55  ;;  %580 = vmatprep.mubr.bf16.mxu0 %v182_v54  ;;  %s893_s30 = sshll.u32 %s1317_s4, 4  ;;  %s894_s30 = int_to_ptr.vmem [resolvable:$true] %s893_s30 }
  0x8d   :  { %550 = vmatprep.subr.bf16.mxu0 %v1117_v56  ;;  %s1276_s8 = scalar_lea.vmem %s894_s30, 32  ;;  %p1281_p5 = scmp.lt.s32.totalorder %s894_s30, %s894_s30 }
  0x8e   :  { %p1277_p4 = scmp.ne.s32.totalorder %s894_s30, %s1276_s8  ;;  %p1282_p6 = scmp.lt.s32.totalorder %s1276_s8, %s1276_s8 }
  0x90   :  { %551 = vmatpush1.bf16.msra.mxu0 %v1115_v58  ;;  %p1283_p7 = por %p1282_p6, %p1281_p5 }
  0x91   :  { %552 = vmatprep.subr.bf16.mxu0 %v1120_v59 }
  0x92   :  { %p1284_p8 = pnand %p1283_p7, %p1277_p4 }
  0x94   :  { %553 = vmatpush1.bf16.msra.mxu0 %v1118_v60 }
  0x95   :  { %554 = vmatprep.subr.bf16.mxu0 %v1123_v61  ;;  %v986_v61 = vld [vmem:[%s1457_s6] ss:$0 sm:$0xff] }
  0x98   :  { %555 = vmatpush1.bf16.msra.mxu0 %v1121_v62 }
  0x99   :  { %556 = vmatprep.subr.bf16.mxu0 %v1126_v63 }
  0x9c   :  { %557 = vmatpush1.bf16.msra.mxu0 %v1124_v0 }
  0x9d   :  { %558 = vmatprep.subr.bf16.mxu0 %v1129_v1 }
  0xa0   :  { %559 = vmatpush1.bf16.msra.mxu0 %v1127_v2 }
  0xa1   :  { %560 = vmatprep.subr.bf16.mxu0 %v1132_v3 }
  0xa4   :  { %561 = vmatpush1.bf16.msra.mxu0 %v1130_v4 }
  0xa5   :  { %562 = vmatprep.subr.bf16.mxu0 %v1135_v5 }
  0xa8   :  { %563 = vmatpush1.bf16.msra.mxu0 %v1133_v6 }
  0xa9   :  { %564 = vmatprep.subr.bf16.mxu0 %v1138_v7 }
  0xac   :  { %565 = vmatpush1.bf16.msra.mxu0 %v1136_v8 }
  0xad   :  { %566 = vmatprep.subr.bf16.mxu0 %v1141_v9 }
  0xb0   :  { %567 = vmatpush1.bf16.msra.mxu0 %v1139_v10 }
  0xb1   :  { %568 = vmatprep.subr.bf16.mxu0 %v1144_v11 }
  0xb4   :  { %569 = vmatpush1.bf16.msra.mxu0 %v1142_v12 }
  0xb5   :  { %570 = vmatprep.subr.bf16.mxu0 %v1147_v13 }
  0xb8   :  { %571 = vmatpush1.bf16.msra.mxu0 %v1145_v15 }
  0xb9   :  { %572 = vmatprep.subr.bf16.mxu0 %v1150_v16 }
  0xbc   :  { %573 = vmatpush1.bf16.msra.mxu0 %v1148_v17 }
  0xbd   :  { %574 = vmatprep.subr.bf16.mxu0 %v1153_v18 }
  0xc0   :  { %575 = vmatpush1.bf16.msra.mxu0 %v1151_v19 }
  0xc1   :  { %576 = vmatprep.subr.bf16.mxu0 %v1156_v20 }
  0xc4   :  { %577 = vmatpush1.bf16.msra.mxu0 %v1154_v21 }
  0xc5   :  { %578 = vmatprep.subr.bf16.mxu0 %v1159_v22 }
  0xc8   :  { %579 = vmatpush1.bf16.msra.mxu0 %v1157_v23 }
  0xcb   :  { %581 = vmatmul.mubr.bf16.vlgmr.msra.gmra.mrb[0].mxu0 %v181_v24 }
 0x19e   :  { %v582_v35 = vpop.f32.mrb[0].mxu0 }
 0x19f   :  { %v1046_v36 = vadd.f32 %v582_v35, %v151_v33  ;;  %v584_v37 = vpop.f32.mrb[1].mxu0 }
 0x1a0   :  { %v1047_v38 = vadd.f32 %v584_v37, %v155_v34  ;;  %v586_v39 = vpop.f32.mrb[2].mxu0 }
 0x1a1   :  { %v589_v40 = vmax.f32 %v1046_v36, 0.0  ;;  %v587_v41 = vpop.f32.mrb[3].mxu0 }
 0x1a2   :  { %v590_v42 = vmax.f32 %v1047_v38, 0.0 }
 0x1a3   :  { %v591_v45 = vpack.c.bf16 %v589_v40, %v589_v40 }
 0x1a4   :  { %v592_v43 = vpack.c.bf16 %v590_v42, %v590_v42 }
 0x1a6   :  { %760 = vmatprep.mubr.bf16.mxu1 %v592_v43 }
 0x1a7   :  { %761 = vmatmul.mubr.bf16.vlgmr.msra.gmra.mrb[0].mxu1 %v591_v45 }
 0x1a8   :  { %1027 = vmatpush3.bf16.msra.mxu1 %v1176_v44  ;;  %1042 = vmatprep.mubr.msk.bf16.mxu1 %vm1316_vm0, %v1315_v29 }
 0x1a9   :  { %1028 = vmatprep.subr.bf16.mxu1 %v1315_v29 }
 0x1ac   :  { %1029 = vmatpush3.bf16.msra.mxu1 %v1177_v46 }
 0x1ad   :  { %1030 = vmatprep.subr.bf16.mxu1 %v1315_v29 }
 0x1b0   :  { %1031 = vmatpush3.bf16.msra.mxu1 %v1178_v14 }
 0x1b1   :  { %1032 = vmatprep.subr.bf16.mxu1 %v1315_v29 }
 0x1b4   :  { %1033 = vmatpush3.bf16.msra.mxu1 %v1179_v47 }
 0x1b5   :  { %1034 = vmatprep.subr.bf16.mxu1 %v1315_v29 }
 0x1b8   :  { %1035 = vmatpush3.bf16.msra.mxu1 %v1180_v48 }
 0x1b9   :  { %1036 = vmatprep.subr.bf16.mxu1 %v1315_v29 }
 0x1bc   :  { %1037 = vmatpush3.bf16.msra.mxu1 %v1181_v49 }
 0x1bd   :  { %1038 = vmatprep.subr.bf16.mxu1 %v1315_v29 }
 0x1c0   :  { %1039 = vmatpush3.bf16.msra.mxu1 %v1182_v50 }
 0x1c1   :  { %1040 = vmatprep.subr.bf16.mxu1 %v1315_v29 }
 0x1c4   :  { %1041 = vmatpush3.bf16.msra.mxu1 %v1183_v51 }
 0x27a   :  { %v1011_v52 = vpop.f32.mrb[0].mxu1 }
 0x27b   :  { %v1012_v54 = vpop.f32.mrb[1].mxu1 }
 0x27c   :  { %v1013_v55 = vadd.f32 %v1012_v54, %v1011_v52  ;;  %v1014_v56 = vpop.f32.mrb[2].mxu1 }
 0x27d   :  { %v1015_v57 = vpop.f32.mrb[3].mxu1 }
 0x27e   :  { %v763_v58 = vadd.f32 %v1013_v55, %v969_v53 }
 0x280   :  { %v768_v59 = vmax.f32 %v763_v58, 0.0 }
 0x282   :  { %v769_v60 = vpack.c.bf16 %v768_v59, %v768_v59 }
 0x284   :  { %1043 = vmatmul.mubr.bf16.vlgmr.msra.gmra.mrb[4].mxu1 %v769_v60 }
 0x357   :  { %v875_v62 = vpop.f32.mrb[4].mxu1 }
 0x358   :  { %v876_v63 = vadd.f32 %v986_v61, %v875_v62  ;;  %v1044_v0 = vpop.f32.mrb[5].mxu1 }
 0x359   :  { %v878_v1 = vpop.f32.mrb[6].mxu1 }
 0x35a   :  { %v881_v2 = vsub.f32 0.0, %v876_v63  ;;  %v1045_v3 = vpop.f32.mrb[7].mxu1 }
 0x35c   :  { %v882_v4 = vmul.f32 1.442695, %v881_v2 }
 0x35e   :  { %1184 = vpow2.f32 %v882_v4 }
 0x368   :  { %v1185_v5 = vpop.eup %1184 }
 0x369   :  { %v884_v6 = vadd.f32 1.0, %v1185_v5 }
 0x36b   :  { %1186 = vrcp.f32 %v884_v6 }
 0x375   :  { %v1187_v7 = vpop.eup %1186 }
 0x376   :  { %886 = vst [vmem:[#allocation10] sm:$0x3] %v1187_v7 }
 0x377   :  { %1287 = shalt.err (!%p1284_p8)
}
 0x378   :  { %s1288_s10 = scalar_lea.hbm %s1458_s7, 32 }
 0x379   :  { %p1289_p9 = scmp.ne.s32.totalorder %s1458_s7, %s1288_s10  ;;  %p1292_p10 = scmp.lt.u32.totalorder %s1288_s10, %s1458_s7 }
 0x37b   :  { %p1294_p11 = pnand %p1292_p10, %p1289_p9 }
 0x37d   :  { %1297 = shalt.err (!%p1294_p11)
}
 0x37e   :  { %896 = dma.vmem_to_hbm [thread:$0]  %s894_s30, 32, %s1458_s7, [#allocation4]  }
 0x37f   :  { %1304 = dma.done.wait [#allocation4], 32  }
 0x380   :  { %1305 = vsyncadd [#allocation4], 4294967264 }
 0x381   :  { %900 = vsyncpa [#allocation3], 1 }
 0x382   :  { %901 = vsyncpa [#allocation6], 1 }
 0x383   :  { %902 = vsyncpa [#allocation9], 1 }
 0x384   :  { %903 = vsyncpa [#allocation4], 1 }

</bundles_post_ra>
